<compile_context>
chip_gen: v6e
topology: v6e:2x2x1
jax: 0.10.0
libtpu: 0.0.40
codegen_flags: <defaults>
</compile_context>

<pallas_src>
import functools
import math

import jax
import jax.numpy as jnp
from jax import lax
from jax.experimental import pallas as pl
from jax.experimental.pallas import tpu as pltpu


_TILE_M = 256                      # row tile for dense kernels (>=256 feeds v6e/v7x MXU width)
_VMEM_LIMIT = 48 * 1024 * 1024     # above every gen's scoped default, below physical VMEM


def _compiler_params():
    return pltpu.CompilerParams(dimension_semantics=("parallel",),
                                vmem_limit_bytes=_VMEM_LIMIT)


def _row_tile(M):
    tm = min(_TILE_M, M)
    return tm, pl.cdiv(M, tm)


def _ln(x, g, b, eps):
    """nn.LayerNorm semantics (biased variance) on the last dim, f32 math."""
    mean = jnp.mean(x, axis=-1, keepdims=True)
    var = jnp.mean((x - mean) ** 2, axis=-1, keepdims=True)
    return (x - mean) * lax.rsqrt(var + eps) * g + b


# --------------------------------------------------------------------------
# Kernels
# --------------------------------------------------------------------------

def ln_kernel(x_ref, g_ref, b_ref, o_ref, *, eps):
    x = x_ref[...].astype(jnp.float32)
    y = _ln(x, g_ref[...].astype(jnp.float32), b_ref[...].astype(jnp.float32), eps)
    o_ref[...] = y.astype(o_ref.dtype)


def ln_qkv_kernel(x_ref, g_ref, b_ref, w_ref, wb_ref, o_ref, *, eps):
    """qkv = LayerNorm(x) @ [Wq|Wk|Wv] + [bq|bk|bv]  for one row tile."""
    x = x_ref[...].astype(jnp.float32)
    xn = _ln(x, g_ref[...].astype(jnp.float32), b_ref[...].astype(jnp.float32), eps)
    y = jnp.dot(xn, w_ref[...].astype(jnp.float32),
                preferred_element_type=jnp.float32) + wb_ref[...].astype(jnp.float32)
    o_ref[...] = y.astype(o_ref.dtype)


def ln_ffn_res_kernel(x_ref, g_ref, b_ref, w1_ref, b1_ref, w2_ref, b2_ref, o_ref, *, eps):
    """y = x + W2 @ relu(W1 @ LayerNorm(x) + b1) + b2  for one row tile."""
    x = x_ref[...].astype(jnp.float32)
    xn = _ln(x, g_ref[...].astype(jnp.float32), b_ref[...].astype(jnp.float32), eps)
    h = jnp.dot(xn, w1_ref[...].astype(jnp.float32),
                preferred_element_type=jnp.float32) + b1_ref[...].astype(jnp.float32)
    h = jnp.maximum(h, 0.0)
    y = jnp.dot(h, w2_ref[...].astype(jnp.float32),
                preferred_element_type=jnp.float32) + b2_ref[...].astype(jnp.float32)
    o_ref[...] = (x + y).astype(o_ref.dtype)


def attn_out_res_kernel(qkv_ref, mask_ref, wo_ref, bo_ref, res_ref, o_ref, *, heads, scale):
    """All-head attention + output projection + residual for one batch element.

    qkv_ref : (1, S, 3D)   packed [Q | K | V] rows (already layer-normed + projected)
    mask_ref: (1, 1, S)    1 = attend, 0 = masked (shared across heads)
    wo_ref  : (D, D), bo_ref: (1, D), res_ref/o_ref: (1, S, D)
    """
    S, D3 = qkv_ref.shape[1], qkv_ref.shape[2]
    D = D3 // 3
    dk = D // heads

    qkv = qkv_ref[0].astype(jnp.float32)            # [S, 3D]
    wo = wo_ref[...].astype(jnp.float32)            # [D, D]
    keep = mask_ref[0].astype(jnp.float32)          # [1, S]
    bias = (keep - 1.0) * 1e9                       # 0 where attend, -1e9 where masked

    # residual + output-projection bias, accumulated head by head (lane-dense [S, D]).
    acc = res_ref[0].astype(jnp.float32) + bo_ref[...].astype(jnp.float32)

    for h in range(heads):                          # static unroll over heads
        q = qkv[:, h * dk:(h + 1) * dk]
        k = qkv[:, D + h * dk:D + (h + 1) * dk]
        v = qkv[:, 2 * D + h * dk:2 * D + (h + 1) * dk]
        s = lax.dot_general(q, k, (((1,), (1,)), ((), ())),
                            preferred_element_type=jnp.float32) * scale      # [S, S]
        s = s * keep + bias                         # exactly masked_fill(mask==0, -1e9)
        m = jnp.max(s, axis=-1, keepdims=True)
        e = jnp.exp(s - m)
        p = e * pl.reciprocal(jnp.sum(e, axis=-1, keepdims=True), approx=True)
        ctx = jnp.dot(p, v, preferred_element_type=jnp.float32)              # [S, dk]
        # output projection folded per head: concat(ctx_h) @ Wo == sum_h ctx_h @ Wo[h]
        acc = acc + jnp.dot(ctx, wo[h * dk:(h + 1) * dk, :],
                            preferred_element_type=jnp.float32)
    o_ref[0] = acc.astype(o_ref.dtype)


# --------------------------------------------------------------------------
# pallas_call wrappers
# --------------------------------------------------------------------------

def layernorm(x2d, g, b, eps=1e-5):
    M, D = x2d.shape
    tm, gm = _row_tile(M)
    return pl.pallas_call(
        functools.partial(ln_kernel, eps=eps),
        out_shape=jax.ShapeDtypeStruct((M, D), x2d.dtype),
        grid=(gm,),
        in_specs=[pl.BlockSpec((tm, D), lambda i: (i, 0)),
                  pl.BlockSpec((1, D), lambda i: (0, 0)),
                  pl.BlockSpec((1, D), lambda i: (0, 0))],
        out_specs=pl.BlockSpec((tm, D), lambda i: (i, 0)),
        input_output_aliases={0: 0},
        compiler_params=_compiler_params(),
    )(x2d, g, b)


def ln_qkv(x2d, g, b, wqkv, bqkv, eps=1e-5):
    M, D = x2d.shape
    N3 = wqkv.shape[1]
    tm, gm = _row_tile(M)
    return pl.pallas_call(
        functools.partial(ln_qkv_kernel, eps=eps),
        out_shape=jax.ShapeDtypeStruct((M, N3), x2d.dtype),
        grid=(gm,),
        in_specs=[pl.BlockSpec((tm, D), lambda i: (i, 0)),
                  pl.BlockSpec((1, D), lambda i: (0, 0)),
                  pl.BlockSpec((1, D), lambda i: (0, 0)),
                  pl.BlockSpec((D, N3), lambda i: (0, 0)),   # weight stays VMEM-resident
                  pl.BlockSpec((1, N3), lambda i: (0, 0))],
        out_specs=pl.BlockSpec((tm, N3), lambda i: (i, 0)),
        compiler_params=_compiler_params(),
    )(x2d, g, b, wqkv, bqkv)


def ln_ffn_res(x2d, g, b, w1, b1, w2, b2, eps=1e-5):
    M, D = x2d.shape
    Dff = w1.shape[1]
    tm, gm = _row_tile(M)
    return pl.pallas_call(
        functools.partial(ln_ffn_res_kernel, eps=eps),
        out_shape=jax.ShapeDtypeStruct((M, D), x2d.dtype),
        grid=(gm,),
        in_specs=[pl.BlockSpec((tm, D), lambda i: (i, 0)),
                  pl.BlockSpec((1, D), lambda i: (0, 0)),
                  pl.BlockSpec((1, D), lambda i: (0, 0)),
                  pl.BlockSpec((D, Dff), lambda i: (0, 0)),
                  pl.BlockSpec((1, Dff), lambda i: (0, 0)),
                  pl.BlockSpec((Dff, D), lambda i: (0, 0)),
                  pl.BlockSpec((1, D), lambda i: (0, 0))],
        out_specs=pl.BlockSpec((tm, D), lambda i: (i, 0)),
        input_output_aliases={0: 0},
        compiler_params=_compiler_params(),
    )(x2d, g, b, w1, b1, w2, b2)


def attn_out_res(qkv, mask, wo, bo, res, *, heads):
    B, S, D3 = qkv.shape
    D = D3 // 3
    scale = 1.0 / math.sqrt(D // heads)
    return pl.pallas_call(
        functools.partial(attn_out_res_kernel, heads=heads, scale=scale),
        out_shape=jax.ShapeDtypeStruct((B, S, D), res.dtype),
        grid=(B,),
        in_specs=[pl.BlockSpec((1, S, D3), lambda b: (b, 0, 0)),
                  pl.BlockSpec((1, 1, S), lambda b: (b, 0, 0)),
                  pl.BlockSpec((D, D), lambda b: (0, 0)),
                  pl.BlockSpec((1, D), lambda b: (0, 0)),
                  pl.BlockSpec((1, S, D), lambda b: (b, 0, 0))],
        out_specs=pl.BlockSpec((1, S, D), lambda b: (b, 0, 0)),
        input_output_aliases={4: 0},
        compiler_params=_compiler_params(),
    )(qkv, mask, wo, bo, res)


# --------------------------------------------------------------------------
# Encoder forward (glue is reshapes only; all math lives in the kernels)
# --------------------------------------------------------------------------

def encoder_layer(x, mask_f, p, *, heads):
    B, S, D = x.shape
    M = B * S
    x2d = x.reshape(M, D)

    # ---- sublayer 0: x + Wo · SelfAttn(LayerNorm(x)) ----
    qkv = ln_qkv(x2d, p["ln1_g"], p["ln1_b"], p["wqkv"], p["bqkv"])        # [M, 3D]
    x = attn_out_res(qkv.reshape(B, S, 3 * D), mask_f, p["wo"], p["bo"],
                     x2d.reshape(B, S, D), heads=heads)                    # [B, S, D]

    # ---- sublayer 1: x + FFN(LayerNorm(x)) ----
    x2d = ln_ffn_res(x.reshape(M, D), p["ln2_g"], p["ln2_b"],
                     p["w1"], p["b1"], p["w2"], p["b2"])
    return x2d.reshape(B, S, D)


def encoder_forward(x, mask, params, *, heads):
    """x: [B, S, D]; mask: [B, 1, S] (1 = attend, 0 = masked)."""
    B, S, D = x.shape
    mask_f = mask.astype(jnp.float32)          # shared across heads, never broadcast to B*H
    layers = params["layers"]
    n_layers = len(layers)
    for idx, lp in enumerate(layers, start=1):
        # TODO(synk): dropout inside the layers is treated as eval-mode identity.
        x = encoder_layer(x, mask_f, lp, heads=heads)
        if idx == n_layers // 2 and n_layers > 1:
            x = layernorm(x.reshape(B * S, D),
                          params["norm2_g"], params["norm2_b"]).reshape(B, S, D)
    return layernorm(x.reshape(B * S, D),
                     params["norm_g"], params["norm_b"]).reshape(B, S, D)


# --------------------------------------------------------------------------
# Deterministic parameter init (Q/K/V projections pre-fused into [D, 3D])
# --------------------------------------------------------------------------

def init_params(key, D, Dff, H, N):
    kit = iter(jax.random.split(key, 16 * N + 4))

    def w(shape, scale=0.1):
        return (scale * jax.random.normal(next(kit), shape)).astype(jnp.float32)

    layers = []
    for _ in range(N):
        layers.append(dict(
            ln1_g=jnp.ones((1, D), jnp.float32), ln1_b=jnp.zeros((1, D), jnp.float32),
            wqkv=w((D, 3 * D)), bqkv=w((1, 3 * D), 0.01),     # [Wq|Wk|Wv], [bq|bk|bv]
            wo=w((D, D)), bo=w((1, D), 0.01),
            ln2_g=jnp.ones((1, D), jnp.float32), ln2_b=jnp.zeros((1, D), jnp.float32),
            w1=w((D, Dff)), b1=w((1, Dff), 0.01),
            w2=w((Dff, D)), b2=w((1, D), 0.01),
        ))
    return dict(
        layers=layers,
        # Encoder.norm / Encoder.norm2 (nn.LayerNorm default init: ones/zeros)
        norm_g=jnp.ones((1, D), jnp.float32), norm_b=jnp.zeros((1, D), jnp.float32),
        norm2_g=jnp.ones((1, D), jnp.float32), norm2_b=jnp.zeros((1, D), jnp.float32),
    )


# --------------------------------------------------------------------------

if __name__ == "__main__":
    B, S, D, H, Dff, N = 2, 8, 32, 4, 64, 2

    key = jax.random.PRNGKey(0)
    kx, kp = jax.random.split(key)
    x = jax.random.normal(kx, (B, S, D), dtype=jnp.float32)
    # src mask [B, 1, S]: mask out the last two key positions of batch element 1
    mask = jnp.ones((B, 1, S), dtype=jnp.float32).at[1, 0, S - 2:].set(0.0)

    params = init_params(kp, D, Dff, H, N)

    fwd = jax.jit(functools.partial(encoder_forward, heads=H))
    out = fwd(x, mask, params)
    jax.block_until_ready(out)

    assert out.shape == (B, S, D) and out.dtype == jnp.float32
    assert bool(jnp.all(jnp.isfinite(out)))
    print("KERNEL_OK")
</pallas_src>

<mosaic_0001>
module attributes {stable_mosaic.version = 11 : i64} {
  func.func @attn_out_res_kernel(%arg0: i32, %arg1: memref<1x8x96xf32, #tpu.memory_space<vmem>>, %arg2: memref<1x1x8xf32, #tpu.memory_space<vmem>>, %arg3: memref<32x32xf32, #tpu.memory_space<vmem>>, %arg4: memref<1x32xf32, #tpu.memory_space<vmem>>, %arg5: memref<1x8x32xf32, #tpu.memory_space<vmem>>, %arg6: memref<1x8x32xf32, #tpu.memory_space<vmem>>) attributes {dimension_semantics = [#tpu.dimension_semantics<parallel>], iteration_bounds = array<i64: 2>, scalar_prefetch = 0 : i64, scratch_operands = 0 : i64, tpu.core_type = #tpu.core_type<tc>, window_params = [{transform_indices = @transform_0, window_bounds = array<i64: 1, 8, 96>}, {transform_indices = @transform_1, window_bounds = array<i64: 1, 1, 8>}, {pipeline_mode = #tpu.pipeline_mode<synchronous>, transform_indices = @transform_2, window_bounds = array<i64: 32, 32>}, {pipeline_mode = #tpu.pipeline_mode<synchronous>, transform_indices = @transform_3, window_bounds = array<i64: 1, 32>}, {transform_indices = @transform_4, window_bounds = array<i64: 1, 8, 32>}, {transform_indices = @transform_5, window_bounds = array<i64: 1, 8, 32>}]} {
    %c0 = arith.constant 0 : index
    %c0_0 = arith.constant 0 : index
    %c0_1 = arith.constant 0 : index
    %0 = vector.load %arg1[%c0, %c0_0, %c0_1] : memref<1x8x96xf32, #tpu.memory_space<vmem>>, vector<1x8x96xf32>
    %1 = vector.shape_cast %0 : vector<1x8x96xf32> to vector<8x96xf32>
    %c0_2 = arith.constant 0 : index
    %c0_3 = arith.constant 0 : index
    %2 = vector.load %arg3[%c0_2, %c0_3] : memref<32x32xf32, #tpu.memory_space<vmem>>, vector<32x32xf32>
    %c0_4 = arith.constant 0 : index
    %c0_5 = arith.constant 0 : index
    %c0_6 = arith.constant 0 : index
    %3 = vector.load %arg2[%c0_4, %c0_5, %c0_6] : memref<1x1x8xf32, #tpu.memory_space<vmem>>, vector<1x1x8xf32>
    %4 = vector.shape_cast %3 : vector<1x1x8xf32> to vector<1x8xf32>
    %cst = arith.constant 1.000000e+00 : f32
    %5 = vector.broadcast %cst : f32 to vector<1x8xf32>
    %6 = arith.subf %4, %5 : vector<1x8xf32>
    %cst_7 = arith.constant 1.000000e+09 : f32
    %7 = vector.broadcast %cst_7 : f32 to vector<1x8xf32>
    %8 = arith.mulf %6, %7 : vector<1x8xf32>
    %c0_8 = arith.constant 0 : index
    %c0_9 = arith.constant 0 : index
    %c0_10 = arith.constant 0 : index
    %9 = vector.load %arg5[%c0_8, %c0_9, %c0_10] : memref<1x8x32xf32, #tpu.memory_space<vmem>>, vector<1x8x32xf32>
    %10 = vector.shape_cast %9 : vector<1x8x32xf32> to vector<8x32xf32>
    %c0_11 = arith.constant 0 : index
    %c0_12 = arith.constant 0 : index
    %11 = vector.load %arg4[%c0_11, %c0_12] : memref<1x32xf32, #tpu.memory_space<vmem>>, vector<1x32xf32>
    %12 = vector.broadcast %11 : vector<1x32xf32> to vector<8x32xf32>
    %13 = arith.addf %10, %12 : vector<8x32xf32>
    %14 = vector.extract_strided_slice %1 {offsets = [0, 0], sizes = [8, 8], strides = [1, 1]} : vector<8x96xf32> to vector<8x8xf32>
    %15 = vector.extract_strided_slice %1 {offsets = [0, 32], sizes = [8, 8], strides = [1, 1]} : vector<8x96xf32> to vector<8x8xf32>
    %16 = vector.extract_strided_slice %1 {offsets = [0, 64], sizes = [8, 8], strides = [1, 1]} : vector<8x96xf32> to vector<8x8xf32>
    %cst_13 = arith.constant dense<0.000000e+00> : vector<8x8xf32>
    %17 = tpu.matmul %14, %15, %cst_13 {dimension_numbers = #tpu.dot_dimension_numbers<[1], [1], [0], [0], [0, 0, 1, 0], [], []>} : vector<8x8xf32>, vector<8x8xf32>, vector<8x8xf32> -> vector<8x8xf32>
    %cst_14 = arith.constant 0.353553385 : f32
    %18 = vector.broadcast %cst_14 : f32 to vector<8x8xf32>
    %19 = arith.mulf %17, %18 : vector<8x8xf32>
    %20 = vector.broadcast %4 : vector<1x8xf32> to vector<8x8xf32>
    %21 = arith.mulf %19, %20 : vector<8x8xf32>
    %22 = vector.broadcast %8 : vector<1x8xf32> to vector<8x8xf32>
    %23 = arith.addf %21, %22 : vector<8x8xf32>
    %cst_15 = arith.constant dense<0xFF800000> : vector<8xf32>
    %24 = vector.multi_reduction <maximumf>, %23, %cst_15 [1] : vector<8x8xf32> to vector<8xf32>
    %25 = vector.shape_cast %24 : vector<8xf32> to vector<8x1xf32>
    %26 = vector.broadcast %25 : vector<8x1xf32> to vector<8x8xf32>
    %27 = arith.subf %23, %26 : vector<8x8xf32>
    %28 = math.exp %27 : vector<8x8xf32>
    %cst_16 = arith.constant dense<0.000000e+00> : vector<8xf32>
    %29 = vector.multi_reduction <add>, %28, %cst_16 [1] : vector<8x8xf32> to vector<8xf32>
    %30 = vector.shape_cast %29 : vector<8xf32> to vector<8x1xf32>
    %31 = tpu.reciprocal %30 {approx = true} : vector<8x1xf32> -> vector<8x1xf32>
    %32 = vector.broadcast %31 : vector<8x1xf32> to vector<8x8xf32>
    %33 = arith.mulf %28, %32 : vector<8x8xf32>
    %cst_17 = arith.constant dense<0.000000e+00> : vector<8x8xf32>
    %34 = tpu.matmul %33, %16, %cst_17 {dimension_numbers = #tpu.dot_dimension_numbers<[1], [0], [0], [1], [0, 0, 1, 1], [], []>} : vector<8x8xf32>, vector<8x8xf32>, vector<8x8xf32> -> vector<8x8xf32>
    %35 = vector.extract_strided_slice %2 {offsets = [0, 0], sizes = [8, 32], strides = [1, 1]} : vector<32x32xf32> to vector<8x32xf32>
    %cst_18 = arith.constant dense<0.000000e+00> : vector<8x32xf32>
    %36 = tpu.matmul %34, %35, %cst_18 {dimension_numbers = #tpu.dot_dimension_numbers<[1], [0], [0], [1], [0, 0, 1, 1], [], []>} : vector<8x8xf32>, vector<8x32xf32>, vector<8x32xf32> -> vector<8x32xf32>
    %37 = arith.addf %13, %36 : vector<8x32xf32>
    %38 = vector.extract_strided_slice %1 {offsets = [0, 8], sizes = [8, 8], strides = [1, 1]} : vector<8x96xf32> to vector<8x8xf32>
    %39 = vector.extract_strided_slice %1 {offsets = [0, 40], sizes = [8, 8], strides = [1, 1]} : vector<8x96xf32> to vector<8x8xf32>
    %40 = vector.extract_strided_slice %1 {offsets = [0, 72], sizes = [8, 8], strides = [1, 1]} : vector<8x96xf32> to vector<8x8xf32>
    %cst_19 = arith.constant dense<0.000000e+00> : vector<8x8xf32>
    %41 = tpu.matmul %38, %39, %cst_19 {dimension_numbers = #tpu.dot_dimension_numbers<[1], [1], [0], [0], [0, 0, 1, 0], [], []>} : vector<8x8xf32>, vector<8x8xf32>, vector<8x8xf32> -> vector<8x8xf32>
    %cst_20 = arith.constant 0.353553385 : f32
    %42 = vector.broadcast %cst_20 : f32 to vector<8x8xf32>
    %43 = arith.mulf %41, %42 : vector<8x8xf32>
    %44 = vector.broadcast %4 : vector<1x8xf32> to vector<8x8xf32>
    %45 = arith.mulf %43, %44 : vector<8x8xf32>
    %46 = vector.broadcast %8 : vector<1x8xf32> to vector<8x8xf32>
    %47 = arith.addf %45, %46 : vector<8x8xf32>
    %cst_21 = arith.constant dense<0xFF800000> : vector<8xf32>
    %48 = vector.multi_reduction <maximumf>, %47, %cst_21 [1] : vector<8x8xf32> to vector<8xf32>
    %49 = vector.shape_cast %48 : vector<8xf32> to vector<8x1xf32>
    %50 = vector.broadcast %49 : vector<8x1xf32> to vector<8x8xf32>
    %51 = arith.subf %47, %50 : vector<8x8xf32>
    %52 = math.exp %51 : vector<8x8xf32>
    %cst_22 = arith.constant dense<0.000000e+00> : vector<8xf32>
    %53 = vector.multi_reduction <add>, %52, %cst_22 [1] : vector<8x8xf32> to vector<8xf32>
    %54 = vector.shape_cast %53 : vector<8xf32> to vector<8x1xf32>
    %55 = tpu.reciprocal %54 {approx = true} : vector<8x1xf32> -> vector<8x1xf32>
    %56 = vector.broadcast %55 : vector<8x1xf32> to vector<8x8xf32>
    %57 = arith.mulf %52, %56 : vector<8x8xf32>
    %cst_23 = arith.constant dense<0.000000e+00> : vector<8x8xf32>
    %58 = tpu.matmul %57, %40, %cst_23 {dimension_numbers = #tpu.dot_dimension_numbers<[1], [0], [0], [1], [0, 0, 1, 1], [], []>} : vector<8x8xf32>, vector<8x8xf32>, vector<8x8xf32> -> vector<8x8xf32>
    %59 = vector.extract_strided_slice %2 {offsets = [8, 0], sizes = [8, 32], strides = [1, 1]} : vector<32x32xf32> to vector<8x32xf32>
    %cst_24 = arith.constant dense<0.000000e+00> : vector<8x32xf32>
    %60 = tpu.matmul %58, %59, %cst_24 {dimension_numbers = #tpu.dot_dimension_numbers<[1], [0], [0], [1], [0, 0, 1, 1], [], []>} : vector<8x8xf32>, vector<8x32xf32>, vector<8x32xf32> -> vector<8x32xf32>
    %61 = arith.addf %37, %60 : vector<8x32xf32>
    %62 = vector.extract_strided_slice %1 {offsets = [0, 16], sizes = [8, 8], strides = [1, 1]} : vector<8x96xf32> to vector<8x8xf32>
    %63 = vector.extract_strided_slice %1 {offsets = [0, 48], sizes = [8, 8], strides = [1, 1]} : vector<8x96xf32> to vector<8x8xf32>
    %64 = vector.extract_strided_slice %1 {offsets = [0, 80], sizes = [8, 8], strides = [1, 1]} : vector<8x96xf32> to vector<8x8xf32>
    %cst_25 = arith.constant dense<0.000000e+00> : vector<8x8xf32>
    %65 = tpu.matmul %62, %63, %cst_25 {dimension_numbers = #tpu.dot_dimension_numbers<[1], [1], [0], [0], [0, 0, 1, 0], [], []>} : vector<8x8xf32>, vector<8x8xf32>, vector<8x8xf32> -> vector<8x8xf32>
    %cst_26 = arith.constant 0.353553385 : f32
    %66 = vector.broadcast %cst_26 : f32 to vector<8x8xf32>
    %67 = arith.mulf %65, %66 : vector<8x8xf32>
    %68 = vector.broadcast %4 : vector<1x8xf32> to vector<8x8xf32>
    %69 = arith.mulf %67, %68 : vector<8x8xf32>
    %70 = vector.broadcast %8 : vector<1x8xf32> to vector<8x8xf32>
    %71 = arith.addf %69, %70 : vector<8x8xf32>
    %cst_27 = arith.constant dense<0xFF800000> : vector<8xf32>
    %72 = vector.multi_reduction <maximumf>, %71, %cst_27 [1] : vector<8x8xf32> to vector<8xf32>
    %73 = vector.shape_cast %72 : vector<8xf32> to vector<8x1xf32>
    %74 = vector.broadcast %73 : vector<8x1xf32> to vector<8x8xf32>
    %75 = arith.subf %71, %74 : vector<8x8xf32>
    %76 = math.exp %75 : vector<8x8xf32>
    %cst_28 = arith.constant dense<0.000000e+00> : vector<8xf32>
    %77 = vector.multi_reduction <add>, %76, %cst_28 [1] : vector<8x8xf32> to vector<8xf32>
    %78 = vector.shape_cast %77 : vector<8xf32> to vector<8x1xf32>
    %79 = tpu.reciprocal %78 {approx = true} : vector<8x1xf32> -> vector<8x1xf32>
    %80 = vector.broadcast %79 : vector<8x1xf32> to vector<8x8xf32>
    %81 = arith.mulf %76, %80 : vector<8x8xf32>
    %cst_29 = arith.constant dense<0.000000e+00> : vector<8x8xf32>
    %82 = tpu.matmul %81, %64, %cst_29 {dimension_numbers = #tpu.dot_dimension_numbers<[1], [0], [0], [1], [0, 0, 1, 1], [], []>} : vector<8x8xf32>, vector<8x8xf32>, vector<8x8xf32> -> vector<8x8xf32>
    %83 = vector.extract_strided_slice %2 {offsets = [16, 0], sizes = [8, 32], strides = [1, 1]} : vector<32x32xf32> to vector<8x32xf32>
    %cst_30 = arith.constant dense<0.000000e+00> : vector<8x32xf32>
    %84 = tpu.matmul %82, %83, %cst_30 {dimension_numbers = #tpu.dot_dimension_numbers<[1], [0], [0], [1], [0, 0, 1, 1], [], []>} : vector<8x8xf32>, vector<8x32xf32>, vector<8x32xf32> -> vector<8x32xf32>
    %85 = arith.addf %61, %84 : vector<8x32xf32>
    %86 = vector.extract_strided_slice %1 {offsets = [0, 24], sizes = [8, 8], strides = [1, 1]} : vector<8x96xf32> to vector<8x8xf32>
    %87 = vector.extract_strided_slice %1 {offsets = [0, 56], sizes = [8, 8], strides = [1, 1]} : vector<8x96xf32> to vector<8x8xf32>
    %88 = vector.extract_strided_slice %1 {offsets = [0, 88], sizes = [8, 8], strides = [1, 1]} : vector<8x96xf32> to vector<8x8xf32>
    %cst_31 = arith.constant dense<0.000000e+00> : vector<8x8xf32>
    %89 = tpu.matmul %86, %87, %cst_31 {dimension_numbers = #tpu.dot_dimension_numbers<[1], [1], [0], [0], [0, 0, 1, 0], [], []>} : vector<8x8xf32>, vector<8x8xf32>, vector<8x8xf32> -> vector<8x8xf32>
    %cst_32 = arith.constant 0.353553385 : f32
    %90 = vector.broadcast %cst_32 : f32 to vector<8x8xf32>
    %91 = arith.mulf %89, %90 : vector<8x8xf32>
    %92 = vector.broadcast %4 : vector<1x8xf32> to vector<8x8xf32>
    %93 = arith.mulf %91, %92 : vector<8x8xf32>
    %94 = vector.broadcast %8 : vector<1x8xf32> to vector<8x8xf32>
    %95 = arith.addf %93, %94 : vector<8x8xf32>
    %cst_33 = arith.constant dense<0xFF800000> : vector<8xf32>
    %96 = vector.multi_reduction <maximumf>, %95, %cst_33 [1] : vector<8x8xf32> to vector<8xf32>
    %97 = vector.shape_cast %96 : vector<8xf32> to vector<8x1xf32>
    %98 = vector.broadcast %97 : vector<8x1xf32> to vector<8x8xf32>
    %99 = arith.subf %95, %98 : vector<8x8xf32>
    %100 = math.exp %99 : vector<8x8xf32>
    %cst_34 = arith.constant dense<0.000000e+00> : vector<8xf32>
    %101 = vector.multi_reduction <add>, %100, %cst_34 [1] : vector<8x8xf32> to vector<8xf32>
    %102 = vector.shape_cast %101 : vector<8xf32> to vector<8x1xf32>
    %103 = tpu.reciprocal %102 {approx = true} : vector<8x1xf32> -> vector<8x1xf32>
    %104 = vector.broadcast %103 : vector<8x1xf32> to vector<8x8xf32>
    %105 = arith.mulf %100, %104 : vector<8x8xf32>
    %cst_35 = arith.constant dense<0.000000e+00> : vector<8x8xf32>
    %106 = tpu.matmul %105, %88, %cst_35 {dimension_numbers = #tpu.dot_dimension_numbers<[1], [0], [0], [1], [0, 0, 1, 1], [], []>} : vector<8x8xf32>, vector<8x8xf32>, vector<8x8xf32> -> vector<8x8xf32>
    %107 = vector.extract_strided_slice %2 {offsets = [24, 0], sizes = [8, 32], strides = [1, 1]} : vector<32x32xf32> to vector<8x32xf32>
    %cst_36 = arith.constant dense<0.000000e+00> : vector<8x32xf32>
    %108 = tpu.matmul %106, %107, %cst_36 {dimension_numbers = #tpu.dot_dimension_numbers<[1], [0], [0], [1], [0, 0, 1, 1], [], []>} : vector<8x8xf32>, vector<8x32xf32>, vector<8x32xf32> -> vector<8x32xf32>
    %109 = arith.addf %85, %108 : vector<8x32xf32>
    %c0_37 = arith.constant 0 : index
    %c0_38 = arith.constant 0 : index
    %c0_39 = arith.constant 0 : index
    %110 = vector.load %arg6[%c0_37, %c0_38, %c0_39] : memref<1x8x32xf32, #tpu.memory_space<vmem>>, vector<1x8x32xf32>
    %111 = vector.shape_cast %110 : vector<1x8x32xf32> to vector<8x32xf32>
    %112 = vector.shape_cast %109 : vector<8x32xf32> to vector<1x8x32xf32>
    tpu.vector_store %arg6[%c0_37, %c0_38, %c0_39], %112 {strides = array<i32>} : memref<1x8x32xf32, #tpu.memory_space<vmem>>, vector<1x8x32xf32>,
    return
  }
  func.func @transform_0(%arg0: i32) -> (i32, i32, i32) {
    %c0_i32 = arith.constant 0 : i32
    %c0_i32_0 = arith.constant 0 : i32
    %c0_i32_1 = arith.constant 0 : i32
    return %arg0, %c0_i32, %c0_i32_0 : i32, i32, i32
  }
  func.func @transform_1(%arg0: i32) -> (i32, i32, i32) {
    %c0_i32 = arith.constant 0 : i32
    %c0_i32_0 = arith.constant 0 : i32
    %c0_i32_1 = arith.constant 0 : i32
    return %arg0, %c0_i32, %c0_i32_0 : i32, i32, i32
  }
  func.func @transform_2(%arg0: i32) -> (i32, i32) {
    %c0_i32 = arith.constant 0 : i32
    %c0_i32_0 = arith.constant 0 : i32
    %c0_i32_1 = arith.constant 0 : i32
    return %c0_i32, %c0_i32_0 : i32, i32
  }
  func.func @transform_3(%arg0: i32) -> (i32, i32) {
    %c0_i32 = arith.constant 0 : i32
    %c0_i32_0 = arith.constant 0 : i32
    %c0_i32_1 = arith.constant 0 : i32
    return %c0_i32, %c0_i32_0 : i32, i32
  }
  func.func @transform_4(%arg0: i32) -> (i32, i32, i32) {
    %c0_i32 = arith.constant 0 : i32
    %c0_i32_0 = arith.constant 0 : i32
    %c0_i32_1 = arith.constant 0 : i32
    return %arg0, %c0_i32, %c0_i32_0 : i32, i32, i32
  }
  func.func @transform_5(%arg0: i32) -> (i32, i32, i32) {
    %c0_i32 = arith.constant 0 : i32
    %c0_i32_0 = arith.constant 0 : i32
    %c0_i32_1 = arith.constant 0 : i32
    return %arg0, %c0_i32, %c0_i32_0 : i32, i32, i32
  }
}

module attributes {stable_mosaic.version = 11 : i64} {
  func.func @ln_qkv_kernel(%arg0: i32, %arg1: memref<16x32xf32, #tpu.memory_space<vmem>>, %arg2: memref<1x32xf32, #tpu.memory_space<vmem>>, %arg3: memref<1x32xf32, #tpu.memory_space<vmem>>, %arg4: memref<32x96xf32, #tpu.memory_space<vmem>>, %arg5: memref<1x96xf32, #tpu.memory_space<vmem>>, %arg6: memref<16x96xf32, #tpu.memory_space<vmem>>) attributes {dimension_semantics = [#tpu.dimension_semantics<parallel>], iteration_bounds = array<i64: 1>, scalar_prefetch = 0 : i64, scratch_operands = 0 : i64, tpu.core_type = #tpu.core_type<tc>, window_params = [{transform_indices = @transform_0, window_bounds = array<i64: 16, 32>}, {pipeline_mode = #tpu.pipeline_mode<synchronous>, transform_indices = @transform_1, window_bounds = array<i64: 1, 32>}, {pipeline_mode = #tpu.pipeline_mode<synchronous>, transform_indices = @transform_2, window_bounds = array<i64: 1, 32>}, {pipeline_mode = #tpu.pipeline_mode<synchronous>, transform_indices = @transform_3, window_bounds = array<i64: 32, 96>}, {pipeline_mode = #tpu.pipeline_mode<synchronous>, transform_indices = @transform_4, window_bounds = array<i64: 1, 96>}, {transform_indices = @transform_5, window_bounds = array<i64: 16, 96>}]} {
    %c0 = arith.constant 0 : index
    %c0_0 = arith.constant 0 : index
    %0 = vector.load %arg1[%c0, %c0_0] : memref<16x32xf32, #tpu.memory_space<vmem>>, vector<16x32xf32>
    %c0_1 = arith.constant 0 : index
    %c0_2 = arith.constant 0 : index
    %1 = vector.load %arg2[%c0_1, %c0_2] : memref<1x32xf32, #tpu.memory_space<vmem>>, vector<1x32xf32>
    %c0_3 = arith.constant 0 : index
    %c0_4 = arith.constant 0 : index
    %2 = vector.load %arg3[%c0_3, %c0_4] : memref<1x32xf32, #tpu.memory_space<vmem>>, vector<1x32xf32>
    %cst = arith.constant dense<0.000000e+00> : vector<16xf32>
    %3 = vector.multi_reduction <add>, %0, %cst [1] : vector<16x32xf32> to vector<16xf32>
    %4 = vector.shape_cast %3 : vector<16xf32> to vector<16x1xf32>
    %cst_5 = arith.constant 3.200000e+01 : f32
    %5 = vector.broadcast %cst_5 : f32 to vector<16x1xf32>
    %6 = arith.divf %4, %5 : vector<16x1xf32>
    %7 = vector.broadcast %6 : vector<16x1xf32> to vector<16x32xf32>
    %8 = arith.subf %0, %7 : vector<16x32xf32>
    %9 = arith.mulf %8, %8 : vector<16x32xf32>
    %cst_6 = arith.constant dense<0.000000e+00> : vector<16xf32>
    %10 = vector.multi_reduction <add>, %9, %cst_6 [1] : vector<16x32xf32> to vector<16xf32>
    %11 = vector.shape_cast %10 : vector<16xf32> to vector<16x1xf32>
    %cst_7 = arith.constant 3.200000e+01 : f32
    %12 = vector.broadcast %cst_7 : f32 to vector<16x1xf32>
    %13 = arith.divf %11, %12 : vector<16x1xf32>
    %14 = vector.broadcast %6 : vector<16x1xf32> to vector<16x32xf32>
    %15 = arith.subf %0, %14 : vector<16x32xf32>
    %cst_8 = arith.constant 9.99999974E-6 : f32
    %16 = vector.broadcast %cst_8 : f32 to vector<16x1xf32>
    %17 = arith.addf %13, %16 : vector<16x1xf32>
    %18 = math.rsqrt %17 : vector<16x1xf32>
    %19 = vector.broadcast %18 : vector<16x1xf32> to vector<16x32xf32>
    %20 = arith.mulf %15, %19 : vector<16x32xf32>
    %21 = vector.broadcast %1 : vector<1x32xf32> to vector<16x32xf32>
    %22 = arith.mulf %20, %21 : vector<16x32xf32>
    %23 = vector.broadcast %2 : vector<1x32xf32> to vector<16x32xf32>
    %24 = arith.addf %22, %23 : vector<16x32xf32>
    %c0_9 = arith.constant 0 : index
    %c0_10 = arith.constant 0 : index
    %25 = vector.load %arg4[%c0_9, %c0_10] : memref<32x96xf32, #tpu.memory_space<vmem>>, vector<32x96xf32>
    %cst_11 = arith.constant dense<0.000000e+00> : vector<16x96xf32>
    %26 = tpu.matmul %24, %25, %cst_11 {dimension_numbers = #tpu.dot_dimension_numbers<[1], [0], [0], [1], [0, 0, 1, 1], [], []>} : vector<16x32xf32>, vector<32x96xf32>, vector<16x96xf32> -> vector<16x96xf32>
    %c0_12 = arith.constant 0 : index
    %c0_13 = arith.constant 0 : index
    %27 = vector.load %arg5[%c0_12, %c0_13] : memref<1x96xf32, #tpu.memory_space<vmem>>, vector<1x96xf32>
    %28 = vector.broadcast %27 : vector<1x96xf32> to vector<16x96xf32>
    %29 = arith.addf %26, %28 : vector<16x96xf32>
    %c0_14 = arith.constant 0 : index
    %c0_15 = arith.constant 0 : index
    %30 = vector.load %arg6[%c0_14, %c0_15] : memref<16x96xf32, #tpu.memory_space<vmem>>, vector<16x96xf32>
    tpu.vector_store %arg6[%c0_14, %c0_15], %29 {strides = array<i32>} : memref<16x96xf32, #tpu.memory_space<vmem>>, vector<16x96xf32>,
    return
  }
  func.func @transform_0(%arg0: i32) -> (i32, i32) {
    %c0_i32 = arith.constant 0 : i32
    %c0_i32_0 = arith.constant 0 : i32
    return %arg0, %c0_i32 : i32, i32
  }
  func.func @transform_1(%arg0: i32) -> (i32, i32) {
    %c0_i32 = arith.constant 0 : i32
    %c0_i32_0 = arith.constant 0 : i32
    %c0_i32_1 = arith.constant 0 : i32
    return %c0_i32, %c0_i32_0 : i32, i32
  }
  func.func @transform_2(%arg0: i32) -> (i32, i32) {
    %c0_i32 = arith.constant 0 : i32
    %c0_i32_0 = arith.constant 0 : i32
    %c0_i32_1 = arith.constant 0 : i32
    return %c0_i32, %c0_i32_0 : i32, i32
  }
  func.func @transform_3(%arg0: i32) -> (i32, i32) {
    %c0_i32 = arith.constant 0 : i32
    %c0_i32_0 = arith.constant 0 : i32
    %c0_i32_1 = arith.constant 0 : i32
    return %c0_i32, %c0_i32_0 : i32, i32
  }
  func.func @transform_4(%arg0: i32) -> (i32, i32) {
    %c0_i32 = arith.constant 0 : i32
    %c0_i32_0 = arith.constant 0 : i32
    %c0_i32_1 = arith.constant 0 : i32
    return %c0_i32, %c0_i32_0 : i32, i32
  }
  func.func @transform_5(%arg0: i32) -> (i32, i32) {
    %c0_i32 = arith.constant 0 : i32
    %c0_i32_0 = arith.constant 0 : i32
    return %arg0, %c0_i32 : i32, i32
  }
}

module attributes {stable_mosaic.version = 11 : i64} {
  func.func @ln_ffn_res_kernel(%arg0: i32, %arg1: memref<16x32xf32, #tpu.memory_space<vmem>>, %arg2: memref<1x32xf32, #tpu.memory_space<vmem>>, %arg3: memref<1x32xf32, #tpu.memory_space<vmem>>, %arg4: memref<32x64xf32, #tpu.memory_space<vmem>>, %arg5: memref<1x64xf32, #tpu.memory_space<vmem>>, %arg6: memref<64x32xf32, #tpu.memory_space<vmem>>, %arg7: memref<1x32xf32, #tpu.memory_space<vmem>>, %arg8: memref<16x32xf32, #tpu.memory_space<vmem>>) attributes {dimension_semantics = [#tpu.dimension_semantics<parallel>], iteration_bounds = array<i64: 1>, scalar_prefetch = 0 : i64, scratch_operands = 0 : i64, tpu.core_type = #tpu.core_type<tc>, window_params = [{transform_indices = @transform_0, window_bounds = array<i64: 16, 32>}, {pipeline_mode = #tpu.pipeline_mode<synchronous>, transform_indices = @transform_1, window_bounds = array<i64: 1, 32>}, {pipeline_mode = #tpu.pipeline_mode<synchronous>, transform_indices = @transform_2, window_bounds = array<i64: 1, 32>}, {pipeline_mode = #tpu.pipeline_mode<synchronous>, transform_indices = @transform_3, window_bounds = array<i64: 32, 64>}, {pipeline_mode = #tpu.pipeline_mode<synchronous>, transform_indices = @transform_4, window_bounds = array<i64: 1, 64>}, {pipeline_mode = #tpu.pipeline_mode<synchronous>, transform_indices = @transform_5, window_bounds = array<i64: 64, 32>}, {pipeline_mode = #tpu.pipeline_mode<synchronous>, transform_indices = @transform_6, window_bounds = array<i64: 1, 32>}, {transform_indices = @transform_7, window_bounds = array<i64: 16, 32>}]} {
    %c0 = arith.constant 0 : index
    %c0_0 = arith.constant 0 : index
    %0 = vector.load %arg1[%c0, %c0_0] : memref<16x32xf32, #tpu.memory_space<vmem>>, vector<16x32xf32>
    %c0_1 = arith.constant 0 : index
    %c0_2 = arith.constant 0 : index
    %1 = vector.load %arg2[%c0_1, %c0_2] : memref<1x32xf32, #tpu.memory_space<vmem>>, vector<1x32xf32>
    %c0_3 = arith.constant 0 : index
    %c0_4 = arith.constant 0 : index
    %2 = vector.load %arg3[%c0_3, %c0_4] : memref<1x32xf32, #tpu.memory_space<vmem>>, vector<1x32xf32>
    %cst = arith.constant dense<0.000000e+00> : vector<16xf32>
    %3 = vector.multi_reduction <add>, %0, %cst [1] : vector<16x32xf32> to vector<16xf32>
    %4 = vector.shape_cast %3 : vector<16xf32> to vector<16x1xf32>
    %cst_5 = arith.constant 3.200000e+01 : f32
    %5 = vector.broadcast %cst_5 : f32 to vector<16x1xf32>
    %6 = arith.divf %4, %5 : vector<16x1xf32>
    %7 = vector.broadcast %6 : vector<16x1xf32> to vector<16x32xf32>
    %8 = arith.subf %0, %7 : vector<16x32xf32>
    %9 = arith.mulf %8, %8 : vector<16x32xf32>
    %cst_6 = arith.constant dense<0.000000e+00> : vector<16xf32>
    %10 = vector.multi_reduction <add>, %9, %cst_6 [1] : vector<16x32xf32> to vector<16xf32>
    %11 = vector.shape_cast %10 : vector<16xf32> to vector<16x1xf32>
    %cst_7 = arith.constant 3.200000e+01 : f32
    %12 = vector.broadcast %cst_7 : f32 to vector<16x1xf32>
    %13 = arith.divf %11, %12 : vector<16x1xf32>
    %14 = vector.broadcast %6 : vector<16x1xf32> to vector<16x32xf32>
    %15 = arith.subf %0, %14 : vector<16x32xf32>
    %cst_8 = arith.constant 9.99999974E-6 : f32
    %16 = vector.broadcast %cst_8 : f32 to vector<16x1xf32>
    %17 = arith.addf %13, %16 : vector<16x1xf32>
    %18 = math.rsqrt %17 : vector<16x1xf32>
    %19 = vector.broadcast %18 : vector<16x1xf32> to vector<16x32xf32>
    %20 = arith.mulf %15, %19 : vector<16x32xf32>
    %21 = vector.broadcast %1 : vector<1x32xf32> to vector<16x32xf32>
    %22 = arith.mulf %20, %21 : vector<16x32xf32>
    %23 = vector.broadcast %2 : vector<1x32xf32> to vector<16x32xf32>
    %24 = arith.addf %22, %23 : vector<16x32xf32>
    %c0_9 = arith.constant 0 : index
    %c0_10 = arith.constant 0 : index
    %25 = vector.load %arg4[%c0_9, %c0_10] : memref<32x64xf32, #tpu.memory_space<vmem>>, vector<32x64xf32>
    %cst_11 = arith.constant dense<0.000000e+00> : vector<16x64xf32>
    %26 = tpu.matmul %24, %25, %cst_11 {dimension_numbers = #tpu.dot_dimension_numbers<[1], [0], [0], [1], [0, 0, 1, 1], [], []>} : vector<16x32xf32>, vector<32x64xf32>, vector<16x64xf32> -> vector<16x64xf32>
    %c0_12 = arith.constant 0 : index
    %c0_13 = arith.constant 0 : index
    %27 = vector.load %arg5[%c0_12, %c0_13] : memref<1x64xf32, #tpu.memory_space<vmem>>, vector<1x64xf32>
    %28 = vector.broadcast %27 : vector<1x64xf32> to vector<16x64xf32>
    %29 = arith.addf %26, %28 : vector<16x64xf32>
    %cst_14 = arith.constant 0.000000e+00 : f32
    %30 = vector.broadcast %cst_14 : f32 to vector<16x64xf32>
    %31 = arith.maximumf %29, %30 : vector<16x64xf32>
    %c0_15 = arith.constant 0 : index
    %c0_16 = arith.constant 0 : index
    %32 = vector.load %arg6[%c0_15, %c0_16] : memref<64x32xf32, #tpu.memory_space<vmem>>, vector<64x32xf32>
    %cst_17 = arith.constant dense<0.000000e+00> : vector<16x32xf32>
    %33 = tpu.matmul %31, %32, %cst_17 {dimension_numbers = #tpu.dot_dimension_numbers<[1], [0], [0], [1], [0, 0, 1, 1], [], []>} : vector<16x64xf32>, vector<64x32xf32>, vector<16x32xf32> -> vector<16x32xf32>
    %c0_18 = arith.constant 0 : index
    %c0_19 = arith.constant 0 : index
    %34 = vector.load %arg7[%c0_18, %c0_19] : memref<1x32xf32, #tpu.memory_space<vmem>>, vector<1x32xf32>
    %35 = vector.broadcast %34 : vector<1x32xf32> to vector<16x32xf32>
    %36 = arith.addf %33, %35 : vector<16x32xf32>
    %37 = arith.addf %0, %36 : vector<16x32xf32>
    %c0_20 = arith.constant 0 : index
    %c0_21 = arith.constant 0 : index
    %38 = vector.load %arg8[%c0_20, %c0_21] : memref<16x32xf32, #tpu.memory_space<vmem>>, vector<16x32xf32>
    tpu.vector_store %arg8[%c0_20, %c0_21], %37 {strides = array<i32>} : memref<16x32xf32, #tpu.memory_space<vmem>>, vector<16x32xf32>,
    return
  }
  func.func @transform_0(%arg0: i32) -> (i32, i32) {
    %c0_i32 = arith.constant 0 : i32
    %c0_i32_0 = arith.constant 0 : i32
    return %arg0, %c0_i32 : i32, i32
  }
  func.func @transform_1(%arg0: i32) -> (i32, i32) {
    %c0_i32 = arith.constant 0 : i32
    %c0_i32_0 = arith.constant 0 : i32
    %c0_i32_1 = arith.constant 0 : i32
    return %c0_i32, %c0_i32_0 : i32, i32
  }
  func.func @transform_2(%arg0: i32) -> (i32, i32) {
    %c0_i32 = arith.constant 0 : i32
    %c0_i32_0 = arith.constant 0 : i32
    %c0_i32_1 = arith.constant 0 : i32
    return %c0_i32, %c0_i32_0 : i32, i32
  }
  func.func @transform_3(%arg0: i32) -> (i32, i32) {
    %c0_i32 = arith.constant 0 : i32
    %c0_i32_0 = arith.constant 0 : i32
    %c0_i32_1 = arith.constant 0 : i32
    return %c0_i32, %c0_i32_0 : i32, i32
  }
  func.func @transform_4(%arg0: i32) -> (i32, i32) {
    %c0_i32 = arith.constant 0 : i32
    %c0_i32_0 = arith.constant 0 : i32
    %c0_i32_1 = arith.constant 0 : i32
    return %c0_i32, %c0_i32_0 : i32, i32
  }
  func.func @transform_5(%arg0: i32) -> (i32, i32) {
    %c0_i32 = arith.constant 0 : i32
    %c0_i32_0 = arith.constant 0 : i32
    %c0_i32_1 = arith.constant 0 : i32
    return %c0_i32, %c0_i32_0 : i32, i32
  }
  func.func @transform_6(%arg0: i32) -> (i32, i32) {
    %c0_i32 = arith.constant 0 : i32
    %c0_i32_0 = arith.constant 0 : i32
    %c0_i32_1 = arith.constant 0 : i32
    return %c0_i32, %c0_i32_0 : i32, i32
  }
  func.func @transform_7(%arg0: i32) -> (i32, i32) {
    %c0_i32 = arith.constant 0 : i32
    %c0_i32_0 = arith.constant 0 : i32
    return %arg0, %c0_i32 : i32, i32
  }
}

module attributes {stable_mosaic.version = 11 : i64} {
  func.func @ln_kernel(%arg0: i32, %arg1: memref<16x32xf32, #tpu.memory_space<vmem>>, %arg2: memref<1x32xf32, #tpu.memory_space<vmem>>, %arg3: memref<1x32xf32, #tpu.memory_space<vmem>>, %arg4: memref<16x32xf32, #tpu.memory_space<vmem>>) attributes {dimension_semantics = [#tpu.dimension_semantics<parallel>], iteration_bounds = array<i64: 1>, scalar_prefetch = 0 : i64, scratch_operands = 0 : i64, tpu.core_type = #tpu.core_type<tc>, window_params = [{transform_indices = @transform_0, window_bounds = array<i64: 16, 32>}, {pipeline_mode = #tpu.pipeline_mode<synchronous>, transform_indices = @transform_1, window_bounds = array<i64: 1, 32>}, {pipeline_mode = #tpu.pipeline_mode<synchronous>, transform_indices = @transform_2, window_bounds = array<i64: 1, 32>}, {transform_indices = @transform_3, window_bounds = array<i64: 16, 32>}]} {
    %c0 = arith.constant 0 : index
    %c0_0 = arith.constant 0 : index
    %0 = vector.load %arg1[%c0, %c0_0] : memref<16x32xf32, #tpu.memory_space<vmem>>, vector<16x32xf32>
    %c0_1 = arith.constant 0 : index
    %c0_2 = arith.constant 0 : index
    %1 = vector.load %arg2[%c0_1, %c0_2] : memref<1x32xf32, #tpu.memory_space<vmem>>, vector<1x32xf32>
    %c0_3 = arith.constant 0 : index
    %c0_4 = arith.constant 0 : index
    %2 = vector.load %arg3[%c0_3, %c0_4] : memref<1x32xf32, #tpu.memory_space<vmem>>, vector<1x32xf32>
    %cst = arith.constant dense<0.000000e+00> : vector<16xf32>
    %3 = vector.multi_reduction <add>, %0, %cst [1] : vector<16x32xf32> to vector<16xf32>
    %4 = vector.shape_cast %3 : vector<16xf32> to vector<16x1xf32>
    %cst_5 = arith.constant 3.200000e+01 : f32
    %5 = vector.broadcast %cst_5 : f32 to vector<16x1xf32>
    %6 = arith.divf %4, %5 : vector<16x1xf32>
    %7 = vector.broadcast %6 : vector<16x1xf32> to vector<16x32xf32>
    %8 = arith.subf %0, %7 : vector<16x32xf32>
    %9 = arith.mulf %8, %8 : vector<16x32xf32>
    %cst_6 = arith.constant dense<0.000000e+00> : vector<16xf32>
    %10 = vector.multi_reduction <add>, %9, %cst_6 [1] : vector<16x32xf32> to vector<16xf32>
    %11 = vector.shape_cast %10 : vector<16xf32> to vector<16x1xf32>
    %cst_7 = arith.constant 3.200000e+01 : f32
    %12 = vector.broadcast %cst_7 : f32 to vector<16x1xf32>
    %13 = arith.divf %11, %12 : vector<16x1xf32>
    %14 = vector.broadcast %6 : vector<16x1xf32> to vector<16x32xf32>
    %15 = arith.subf %0, %14 : vector<16x32xf32>
    %cst_8 = arith.constant 9.99999974E-6 : f32
    %16 = vector.broadcast %cst_8 : f32 to vector<16x1xf32>
    %17 = arith.addf %13, %16 : vector<16x1xf32>
    %18 = math.rsqrt %17 : vector<16x1xf32>
    %19 = vector.broadcast %18 : vector<16x1xf32> to vector<16x32xf32>
    %20 = arith.mulf %15, %19 : vector<16x32xf32>
    %21 = vector.broadcast %1 : vector<1x32xf32> to vector<16x32xf32>
    %22 = arith.mulf %20, %21 : vector<16x32xf32>
    %23 = vector.broadcast %2 : vector<1x32xf32> to vector<16x32xf32>
    %24 = arith.addf %22, %23 : vector<16x32xf32>
    %c0_9 = arith.constant 0 : index
    %c0_10 = arith.constant 0 : index
    %25 = vector.load %arg4[%c0_9, %c0_10] : memref<16x32xf32, #tpu.memory_space<vmem>>, vector<16x32xf32>
    tpu.vector_store %arg4[%c0_9, %c0_10], %24 {strides = array<i32>} : memref<16x32xf32, #tpu.memory_space<vmem>>, vector<16x32xf32>,
    return
  }
  func.func @transform_0(%arg0: i32) -> (i32, i32) {
    %c0_i32 = arith.constant 0 : i32
    %c0_i32_0 = arith.constant 0 : i32
    return %arg0, %c0_i32 : i32, i32
  }
  func.func @transform_1(%arg0: i32) -> (i32, i32) {
    %c0_i32 = arith.constant 0 : i32
    %c0_i32_0 = arith.constant 0 : i32
    %c0_i32_1 = arith.constant 0 : i32
    return %c0_i32, %c0_i32_0 : i32, i32
  }
  func.func @transform_2(%arg0: i32) -> (i32, i32) {
    %c0_i32 = arith.constant 0 : i32
    %c0_i32_0 = arith.constant 0 : i32
    %c0_i32_1 = arith.constant 0 : i32
    return %c0_i32, %c0_i32_0 : i32, i32
  }
  func.func @transform_3(%arg0: i32) -> (i32, i32) {
    %c0_i32 = arith.constant 0 : i32
    %c0_i32_0 = arith.constant 0 : i32
    return %arg0, %c0_i32 : i32, i32
  }
}

</mosaic_0001>

<bundles_post_ra>
// kernel: encoder_forward.10
= control target key start
LH: loop header
LB: loop body
LE: loop exit
PB: predicated region body
PF: predicated region fallthrough
CT: control target
= control target key end

     0   :  { %vm30_vm0 = vcmask 261120   ;;  %vm183_vm1 = vcmask 523264   ;;  %s449_s0 = inlined_call_operand.vmem [shape: f32[16,32], index: 0, kind: input, shape index: {}, may-alias: {0,7}]   ;;  %s450_s3 = inlined_call_operand.vmem [shape: f32[32,64], index: 3, kind: input, shape index: {}]   ;;  %s451_s5 = inlined_call_operand.vmem [shape: f32[64,32], index: 5, kind: input, shape index: {}]   ;;  %s452_s1 = inlined_call_operand.vmem [shape: f32[1,32], index: 1, kind: input, shape index: {}]   ;;  %s453_s2 = inlined_call_operand.vmem [shape: f32[1,32], index: 2, kind: input, shape index: {}]   ;;  %s454_s4 = inlined_call_operand.vmem [shape: f32[1,64], index: 4, kind: input, shape index: {}]   ;;  %s455_s6 = inlined_call_operand.vmem [shape: f32[1,32], index: 6, kind: input, shape index: {}]   ;;  %s456_s7 = inlined_call_operand.vmem [shape: f32[16,32], index: 7, kind: output, shape index: {}, may-alias: {0,7}]  }
   0x1   :  { %v374_v0 = vld [vmem:[%s449_s0] sm:$0xff]  ;;  %v379_v1 = vld [vmem:[%s449_s0 + $0x8] sm:$0xff]  ;;  %v77_v14 = vld [vmem:[%s450_s3 + $0x18] sm:$0xff] }
   0x2   :  { %v31_v2 = vsel %vm30_vm0, %v374_v0, 0.0  ;;  %v34_v3 = vsel %vm30_vm0, %v379_v1, 0.0  ;;  %v76_v15 = vld [vmem:[%s450_s3 + $0x10] sm:$0xff]  ;;  %297 = vmatprep.subr.mxu0 %v77_v14  ;;  %v75_v16 = vld [vmem:[%s450_s3 + $0x8] sm:$0xff]  ;;  %v74_v17 = vld [vmem:[%s450_s3] sm:$0xff] }
   0x3   :  { %32 = vadd.xlane.f32.xlu0 %v31_v2  ;;  %298 = vmatpush3.msra.mxu0 %v77_v14  ;;  %v175_v18 = vld [vmem:[%s451_s5 + $0x38] sm:$0xff]  ;;  %v174_v19 = vld [vmem:[%s451_s5 + $0x30] sm:$0xff]  ;;  %v173_v20 = vld [vmem:[%s451_s5 + $0x28] sm:$0xff] }
   0x4   :  { %299 = vmatprep.subr.mxu0 %v76_v15  ;;  %308 = vmatprep.subr.mxu1 %v175_v18  ;;  %v172_v21 = vld [vmem:[%s451_s5 + $0x20] sm:$0xff]  ;;  %v171_v38 = vld [vmem:[%s451_s5 + $0x18] sm:$0xff]  ;;  %v170_v39 = vld [vmem:[%s451_s5 + $0x10] sm:$0xff] }
   0x5   :  { %300 = vmatpush3.msra.mxu0 %v76_v15  ;;  %309 = vmatpush3.msra.mxu1 %v175_v18  ;;  %v273_v29 = vld [vmem:[%s452_s1] ss:$0 sm:$0xff]  ;;  %v169_v40 = vld [vmem:[%s451_s5 + $0x8] sm:$0xff] }
   0x6   :  { %301 = vmatprep.subr.mxu0 %v75_v16  ;;  %310 = vmatprep.subr.mxu1 %v174_v19  ;;  %v274_v31 = vld [vmem:[%s453_s2] ss:$0 sm:$0xff] }
   0x7   :  { %35 = vadd.xlane.f32.xlu0 %v34_v3  ;;  %302 = vmatpush3.msra.mxu0 %v75_v16  ;;  %v168_v41 = vld [vmem:[%s451_s5] sm:$0xff] }
   0x8   :  { %303 = vmatprep.subr.mxu0 %v74_v17  ;;  %311 = vmatpush3.msra.mxu1 %v174_v19  ;;  %v275_v42 = vld [vmem:[%s454_s4] ss:$0 sm:$0xff] }
   0x9   :  { %304 = vmatpush3.msra.mxu0 %v74_v17  ;;  %312 = vmatprep.subr.mxu1 %v173_v20  ;;  %v278_v49 = vld [vmem:[%s455_s6] ss:$0 sm:$0xff] }
   0xa   :  { %313 = vmatpush3.msra.mxu1 %v173_v20 }
   0xb   :  { %314 = vmatprep.subr.mxu1 %v172_v21 }
   0xc   :  { %315 = vmatpush3.msra.mxu1 %v172_v21 }
   0xd   :  { %316 = vmatprep.subr.mxu1 %v171_v38 }
   0xe   :  { %317 = vmatpush3.msra.mxu1 %v171_v38 }
   0xf   :  { %318 = vmatprep.subr.mxu1 %v170_v39 }
  0x10   :  { %319 = vmatpush3.msra.mxu1 %v170_v39 }
  0x11   :  { %320 = vmatprep.subr.mxu1 %v169_v40 }
  0x12   :  { %321 = vmatpush3.msra.mxu1 %v169_v40 }
  0x13   :  { %322 = vmatprep.subr.mxu1 %v168_v41 }
  0x14   :  { %323 = vmatpush3.msra.mxu1 %v168_v41 }
  0x8c   :  { %v33_v4 = vpop.xlane.xlu0 %32 }
  0x8d   :  { %v38_v5 = vmul.f32 0.03125, %v33_v4 }
  0x8f   :  { %v40_v6 = vsub.f32 %v374_v0, %v38_v5 }
  0x90   :  { %v36_v7 = vpop.xlane.xlu0 %35 }
  0x91   :  { %v39_v8 = vmul.f32 0.03125, %v36_v7  ;;  %v42_v9 = vmul.f32 %v40_v6, %v40_v6 }
  0x93   :  { %v41_v10 = vsub.f32 %v379_v1, %v39_v8  ;;  %v44_v11 = vsel %vm30_vm0, %v42_v9, 0.0 }
  0x94   :  { %45 = vadd.xlane.f32.xlu1 %v44_v11 }
  0x95   :  { %v43_v12 = vmul.f32 %v41_v10, %v41_v10 }
  0x97   :  { %v47_v13 = vsel %vm30_vm0, %v43_v12, 0.0 }
  0x98   :  { %48 = vadd.xlane.f32.xlu1 %v47_v13 }
 0x11d   :  { %v46_v22 = vpop.xlane.xlu1 %45 }
 0x11e   :  { %v50_v23 = vmul.f32 0.03125, %v46_v22 }
 0x120   :  { %v52_v24 = vadd.f32 1e-05, %v50_v23 }
 0x121   :  { %v49_v25 = vpop.xlane.xlu1 %48 }
 0x122   :  { %327 = vrsqrt.f32 %v52_v24  ;;  %v51_v26 = vmul.f32 0.03125, %v49_v25 }
 0x124   :  { %v53_v27 = vadd.f32 1e-05, %v51_v26 }
 0x126   :  { %329 = vrsqrt.f32 %v53_v27 }
 0x12f   :  { %v328_v28 = vpop.eup %327 }
 0x130   :  { %v56_v30 = vmul.f32 %v328_v28, %v40_v6 }
 0x132   :  { %v64_v32 = vmul.f32 %v273_v29, %v56_v30 }
 0x133   :  { %v330_v33 = vpop.eup %329 }
 0x134   :  { %v57_v34 = vmul.f32 %v330_v33, %v41_v10  ;;  %v72_v35 = vadd.f32 %v274_v31, %v64_v32 }
 0x136   :  { %v65_v36 = vmul.f32 %v273_v29, %v57_v34  ;;  %305 = vmatprep.mubr.msk.f32.mxu0 %vm30_vm0, %v72_v35 }
 0x138   :  { %v73_v37 = vadd.f32 %v274_v31, %v65_v36 }
 0x13a   :  { %306 = vmatmul.mubr.msk.f32.vlgmr.msra.gmra.mxu0 %vm30_vm0, %v73_v37 }
 0x1fa   :  { %v307_v43 = vpop.f32.mrf.mxu0 }
 0x1fb   :  { %v163_v44 = vadd.f32 %v307_v43, %v275_v42 }
 0x1fc   :  { %v157_v45 = vpop.f32.mrf.mxu0 }
 0x1fd   :  { %v158_v46 = vadd.f32 %v275_v42, %v157_v45  ;;  %v167_v48 = vmax.f32 %v163_v44, 0.0 }
 0x1ff   :  { %v166_v47 = vmax.f32 %v158_v46, 0.0 }
 0x201   :  { %324 = vmatprep.mubr.msk.f32.mxu1 %vm183_vm1, %v166_v47 }
 0x202   :  { %325 = vmatmul.mubr.msk.f32.vlgmr.msra.gmra.mxu1 %vm183_vm1, %v167_v48 }
 0x2c2   :  { %v326_v50 = vpop.f32.mrf.mxu1 }
 0x2c3   :  { %v262_v51 = vadd.f32 %v326_v50, %v278_v49 }
 0x2c4   :  { %v256_v52 = vpop.f32.mrf.mxu1 }
 0x2c5   :  { %v266_v53 = vadd.f32 %v262_v51, %v379_v1  ;;  %v257_v54 = vadd.f32 %v278_v49, %v256_v52 }
 0x2c7   :  { %268 = vst.msk [vmem:[%s456_s7 + $0x8] sm:$0xff] %vm30_vm0, %v266_v53  ;;  %v265_v55 = vadd.f32 %v257_v54, %v374_v0 }
 0x2c9   :  { %267 = vst.msk [vmem:[%s456_s7] sm:$0xff] %vm30_vm0, %v265_v55 }

// kernel: encoder_forward.11
= control target key start
LH: loop header
LB: loop body
LE: loop exit
PB: predicated region body
PF: predicated region fallthrough
CT: control target
= control target key end

     0   :  { %vm18_vm0 = vcmask 261120   ;;  %s118_s0 = inlined_call_operand.vmem [shape: f32[16,32], index: 0, kind: input, shape index: {}, may-alias: {0,3}]   ;;  %s119_s1 = inlined_call_operand.vmem [shape: f32[1,32], index: 1, kind: input, shape index: {}]   ;;  %s120_s2 = inlined_call_operand.vmem [shape: f32[1,32], index: 2, kind: input, shape index: {}]   ;;  %s121_s3 = inlined_call_operand.vmem [shape: f32[16,32], index: 3, kind: output, shape index: {}, may-alias: {0,3}]  }
   0x1   :  { %v14_v0 = vld [vmem:[%s118_s0] sm:$0xff]  ;;  %v15_v1 = vld [vmem:[%s118_s0 + $0x8] sm:$0xff] }
   0x2   :  { %v19_v2 = vsel %vm18_vm0, %v14_v0, 0.0  ;;  %v22_v3 = vsel %vm18_vm0, %v15_v1, 0.0  ;;  %v68_v21 = vld [vmem:[%s119_s1] ss:$0 sm:$0xff] }
   0x3   :  { %20 = vadd.xlane.f32.xlu0 %v19_v2  ;;  %v69_v23 = vld [vmem:[%s120_s2] ss:$0 sm:$0xff] }
   0x7   :  { %23 = vadd.xlane.f32.xlu0 %v22_v3 }
  0x8c   :  { %v21_v4 = vpop.xlane.xlu0 %20 }
  0x8d   :  { %v26_v5 = vmul.f32 0.03125, %v21_v4 }
  0x8f   :  { %v28_v6 = vsub.f32 %v14_v0, %v26_v5 }
  0x90   :  { %v24_v7 = vpop.xlane.xlu0 %23 }
  0x91   :  { %v27_v8 = vmul.f32 0.03125, %v24_v7  ;;  %v30_v9 = vmul.f32 %v28_v6, %v28_v6 }
  0x93   :  { %v29_v10 = vsub.f32 %v15_v1, %v27_v8  ;;  %v32_v11 = vsel %vm18_vm0, %v30_v9, 0.0 }
  0x94   :  { %33 = vadd.xlane.f32.xlu1 %v32_v11 }
  0x95   :  { %v31_v12 = vmul.f32 %v29_v10, %v29_v10 }
  0x97   :  { %v35_v13 = vsel %vm18_vm0, %v31_v12, 0.0 }
  0x98   :  { %36 = vadd.xlane.f32.xlu1 %v35_v13 }
 0x11d   :  { %v34_v14 = vpop.xlane.xlu1 %33 }
 0x11e   :  { %v38_v15 = vmul.f32 0.03125, %v34_v14 }
 0x120   :  { %v40_v16 = vadd.f32 1e-05, %v38_v15 }
 0x121   :  { %v37_v17 = vpop.xlane.xlu1 %36 }
 0x122   :  { %70 = vrsqrt.f32 %v40_v16  ;;  %v39_v18 = vmul.f32 0.03125, %v37_v17 }
 0x124   :  { %v41_v19 = vadd.f32 1e-05, %v39_v18 }
 0x126   :  { %72 = vrsqrt.f32 %v41_v19 }
 0x12f   :  { %v71_v20 = vpop.eup %70 }
 0x130   :  { %v44_v22 = vmul.f32 %v71_v20, %v28_v6 }
 0x132   :  { %v52_v24 = vmul.f32 %v68_v21, %v44_v22 }
 0x133   :  { %v73_v25 = vpop.eup %72 }
 0x134   :  { %v60_v26 = vadd.f32 %v69_v23, %v52_v24  ;;  %v45_v27 = vmul.f32 %v73_v25, %v29_v10 }
 0x136   :  { %62 = vst.msk [vmem:[%s121_s3] sm:$0xff] %vm18_vm0, %v60_v26  ;;  %v53_v28 = vmul.f32 %v68_v21, %v45_v27 }
 0x138   :  { %v61_v29 = vadd.f32 %v69_v23, %v53_v28 }
 0x13a   :  { %63 = vst.msk [vmem:[%s121_s3 + $0x8] sm:$0xff] %vm18_vm0, %v61_v29 }

// kernel: encoder_forward.8
= control target key start
LH: loop header
LB: loop body
LE: loop exit
PB: predicated region body
PF: predicated region fallthrough
CT: control target
= control target key end

     0   :  { %vm24_vm0 = vcmask 261120   ;;  %vm160_vm1 = vcmask 785408   ;;  %s262_s0 = inlined_call_operand.vmem [shape: f32[16,32], index: 0, kind: input, shape index: {}]   ;;  %s263_s3 = inlined_call_operand.vmem [shape: f32[32,96], index: 3, kind: input, shape index: {}]   ;;  %s264_s1 = inlined_call_operand.vmem [shape: f32[1,32], index: 1, kind: input, shape index: {}]   ;;  %s265_s2 = inlined_call_operand.vmem [shape: f32[1,32], index: 2, kind: input, shape index: {}]   ;;  %s266_s4 = inlined_call_operand.vmem [shape: f32[1,96], index: 4, kind: input, shape index: {}]   ;;  %s267_s5 = inlined_call_operand.vmem [shape: f32[16,96], index: 5, kind: output, shape index: {}]  }
   0x1   :  { %v20_v0 = vld [vmem:[%s262_s0] sm:$0xff]  ;;  %v21_v1 = vld [vmem:[%s262_s0 + $0x8] sm:$0xff]  ;;  %v71_v14 = vld [vmem:[%s263_s3 + $0x18] sm:$0xff] }
   0x2   :  { %v25_v2 = vsel %vm24_vm0, %v20_v0, 0.0  ;;  %v28_v3 = vsel %vm24_vm0, %v21_v1, 0.0  ;;  %v70_v15 = vld [vmem:[%s263_s3 + $0x10] sm:$0xff]  ;;  %178 = vmatprep.subr.mxu0 %v71_v14  ;;  %v69_v16 = vld [vmem:[%s263_s3 + $0x8] sm:$0xff]  ;;  %v68_v17 = vld [vmem:[%s263_s3] sm:$0xff] }
   0x3   :  { %26 = vadd.xlane.f32.xlu0 %v25_v2  ;;  %179 = vmatpush3.msra.mxu0 %v71_v14  ;;  %v167_v25 = vld [vmem:[%s264_s1] ss:$0 sm:$0xff] }
   0x4   :  { %180 = vmatprep.subr.mxu0 %v70_v15  ;;  %v168_v27 = vld [vmem:[%s265_s2] ss:$0 sm:$0xff] }
   0x5   :  { %181 = vmatpush3.msra.mxu0 %v70_v15  ;;  %v169_v34 = vld [vmem:[%s266_s4] ss:$0 sm:$0xff] }
   0x6   :  { %182 = vmatprep.subr.mxu0 %v69_v16 }
   0x7   :  { %29 = vadd.xlane.f32.xlu0 %v28_v3  ;;  %183 = vmatpush3.msra.mxu0 %v69_v16 }
   0x8   :  { %184 = vmatprep.subr.mxu0 %v68_v17 }
   0x9   :  { %185 = vmatpush3.msra.mxu0 %v68_v17 }
  0x8c   :  { %v27_v4 = vpop.xlane.xlu0 %26 }
  0x8d   :  { %v32_v5 = vmul.f32 0.03125, %v27_v4 }
  0x8f   :  { %v34_v6 = vsub.f32 %v20_v0, %v32_v5 }
  0x90   :  { %v30_v7 = vpop.xlane.xlu0 %29 }
  0x91   :  { %v33_v8 = vmul.f32 0.03125, %v30_v7  ;;  %v36_v9 = vmul.f32 %v34_v6, %v34_v6 }
  0x93   :  { %v35_v10 = vsub.f32 %v21_v1, %v33_v8  ;;  %v38_v11 = vsel %vm24_vm0, %v36_v9, 0.0 }
  0x94   :  { %39 = vadd.xlane.f32.xlu1 %v38_v11 }
  0x95   :  { %v37_v12 = vmul.f32 %v35_v10, %v35_v10 }
  0x97   :  { %v41_v13 = vsel %vm24_vm0, %v37_v12, 0.0 }
  0x98   :  { %42 = vadd.xlane.f32.xlu1 %v41_v13 }
 0x11d   :  { %v40_v18 = vpop.xlane.xlu1 %39 }
 0x11e   :  { %v44_v19 = vmul.f32 0.03125, %v40_v18 }
 0x120   :  { %v46_v20 = vadd.f32 1e-05, %v44_v19 }
 0x121   :  { %v43_v21 = vpop.xlane.xlu1 %42 }
 0x122   :  { %189 = vrsqrt.f32 %v46_v20  ;;  %v45_v22 = vmul.f32 0.03125, %v43_v21 }
 0x124   :  { %v47_v23 = vadd.f32 1e-05, %v45_v22 }
 0x126   :  { %191 = vrsqrt.f32 %v47_v23 }
 0x12f   :  { %v190_v24 = vpop.eup %189 }
 0x130   :  { %v50_v26 = vmul.f32 %v190_v24, %v34_v6 }
 0x132   :  { %v58_v28 = vmul.f32 %v167_v25, %v50_v26 }
 0x133   :  { %v192_v29 = vpop.eup %191 }
 0x134   :  { %v51_v30 = vmul.f32 %v192_v29, %v35_v10  ;;  %v66_v31 = vadd.f32 %v168_v27, %v58_v28 }
 0x136   :  { %v59_v32 = vmul.f32 %v167_v25, %v51_v30  ;;  %186 = vmatprep.mubr.msk.f32.mxu0 %vm24_vm0, %v66_v31 }
 0x138   :  { %v67_v33 = vadd.f32 %v168_v27, %v59_v32 }
 0x13a   :  { %187 = vmatmul.mubr.msk.f32.vlgmr.msra.gmra.mxu0 %vm24_vm0, %v67_v33 }
 0x1fa   :  { %v188_v35 = vpop.f32.mrf.mxu0 }
 0x1fb   :  { %v157_v36 = vadd.f32 %v188_v35, %v169_v34 }
 0x1fc   :  { %v151_v37 = vpop.f32.mrf.mxu0 }
 0x1fd   :  { %162 = vst.msk [vmem:[%s267_s5 + $0x8] sm:$0xff] %vm160_vm1, %v157_v36  ;;  %v152_v38 = vadd.f32 %v169_v34, %v151_v37 }
 0x1ff   :  { %161 = vst.msk [vmem:[%s267_s5] sm:$0xff] %vm160_vm1, %v152_v38 }

// kernel: encoder_forward.9
= control target key start
LH: loop header
LB: loop body
LE: loop exit
PB: predicated region body
PF: predicated region fallthrough
CT: control target
= control target key end

     0   :  { %s1524_s18 = smov 0   ;;  %s1653_s0 = inlined_call_operand.vmem [shape: f32[2,8,96], index: 0, kind: input, shape index: {}]   ;;  %s1654_s1 = inlined_call_operand.vmem [shape: f32[2,1,8], index: 1, kind: input, shape index: {}]   ;;  %s1655_s2 = inlined_call_operand.vmem [shape: f32[32,32], index: 2, kind: input, shape index: {}]   ;;  %s1656_s3 = inlined_call_operand.vmem [shape: f32[1,32], index: 3, kind: input, shape index: {}]   ;;  %s1657_s4 = inlined_call_operand.vmem [shape: f32[2,8,32], index: 4, kind: input, shape index: {}, may-alias: {4,5}]   ;;  %s1658_s5 = inlined_call_operand.vmem [shape: f32[2,8,32], index: 5, kind: output, shape index: {}, may-alias: {4,5}]  }
   0x1 LB: > { %s1324_s19 = sadd.s32 4294967295, %s1479_s18   ;;  %p1328_p0 = scmp.ge.s32.totalorder %s1479_s18, 1  ;;  %s1479_s18 = sphi %s1524_s18, %s15_s18  }
   0x2   : > { %p203_p1 = scmp.lt.s32.totalorder %s1479_s18, 3 }
   0x4   : > { %p204_p2 = pnand %p1328_p0, %p203_p1 }
   0x5   : > { %p236_p3 = scmp.lt.s32.totalorder (!%p204_p2), %s1324_s19, 1  ;;  %s1483_s24 = smov (!%p204_p2), 96  }
   0x6   : > { %207 = sbr.rel (%p204_p2) target bundleno = 2260 (0x8d4), region = 40  ;;  %s1484_s25 = smov (!%p204_p2), 120  }
   0x7   : > { %s1485_s26 = smov (!%p204_p2), 88   ;;  %s1486_s30 = smov (!%p204_p2), 64  }
   0x8   : > { %s1487_s6 = smov (!%p204_p2), 56   ;;  %s1488_s7 = smov (!%p204_p2), 80  }
   0x9   : > { %s1489_s8 = smov (!%p204_p2), 112   ;;  %s1490_s13 = smov (!%p204_p2), 72  }
   0xa   : > { %s1491_s14 = smov (!%p204_p2), 104   ;;  %s1492_s22 = smov (!%p204_p2), 48  }
   0xb   : > { %v1481_v0 = vmov 0.0   ;;  %vm1482_vm0 = vmmov 0   ;;  %s1660_s19 = smov (!%p236_p3, %s1324_s19), 1  ;;  %vm271_vm1 = vcmask 64512   ;;  %v348_v5 = vlaneseq  ;;  %v252_v39 = vld [vmem:[%s1655_s2] sm:$0xff]  ;;  %v253_v48 = vld [vmem:[%s1655_s2 + $0x8] sm:$0xff] }
   0xc   : > { %1376 = vmatprep.subr.mxu0 %v1481_v0  ;;  %1378 = vmatprep.mubr.msk.f32.mxu0 %vm1482_vm0, %v1481_v0  ;;  %s1538_s20 = sshll.u32 %s1660_s19, 3  ;;  %s242_s29 = scalar_lea.vmem %s1654_s1, %s1660_s19  ;;  %vm1248_vm2 = vcmask 261120  }
   0xd   : > { %1381 = vmatprep.subr.mxu1 %v1481_v0  ;;  %1383 = vmatprep.mubr.msk.f32.mxu1 %vm1482_vm0, %v1481_v0  ;;  %s239_s23 = scalar_lea.vmem %s1653_s0, %s1538_s20  ;;  %v256_v6 = vld [vmem:[%s242_s29] sm:$0x1]  ;;  %v349_v7 = vshrl.u32 %v348_v5, 7  ;;  %s246_s17 = scalar_lea.vmem %s1657_s4, %s1538_s20 }
   0xe   : > { %v1544_v1 = vld [vmem:[%s239_s23] sm:$0xff]  ;;  %v1332_v8 = vadd.f32 -1.0, %v256_v6 }
   0xf   : > { %269 = vrot.lane.b32.xlu0 %v1544_v1, %s1483_s24  ;;  %522 = vrot.lane.b32.xlu1 %v1544_v1, %s1484_s25  ;;  %v350_v9 = vsub.s32 0, %v349_v7  ;;  %s1493_s25 = smov 40  }
  0x10   : > { %v258_v10 = vmul.f32 1e+09, %v1332_v8 }
  0x11   : > { %v1563_v11 = vrot.slane %v256_v6, %v350_v9 }
  0x12   : > { %v1565_v14 = vrot.slane %v258_v10, %v350_v9 }
  0x13   : > { %524 = vrot.lane.b32.xlu0 %v1544_v1, %s1485_s26 }
  0x81   : > { %v270_v2 = vpop.permute.xlu0 %269  ;;  %v523_v4 = vpop.permute.xlu1 %522 }
  0x82   : > { %1377 = vmatpush3.xpose.msk.msra.mxu0 %vm271_vm1, %v270_v2  ;;  %v259_v2 = vld [vmem:[%s246_s17] sm:$0xff] }
  0x83   : > { %1391 = vmatprep.subr.mxu0 %v1481_v0 }
  0x85   : > { %1379 = vmatmul.mubr.msk.f32.vlgmr.msra.gmra.mxu0 %vm271_vm1, %v1544_v1  ;;  %v525_v3 = vpop.permute.xlu0 %524 }
  0x86   : > { %1392 = vmatpush3.xpose.msk.msra.mxu0 %vm271_vm1, %v525_v3  ;;  %1393 = vmatprep.mubr.msk.f32.mxu0 %vm1482_vm0, %v1481_v0  ;;  %v1333_v3 = vld [vmem:[%s1656_s3] ss:$0 sm:$0xff] }
  0x87   : > { %1401 = vmatprep.subr.mxu0 %v1481_v0 }
  0x89   : > { %1394 = vmatmul.mubr.msk.f32.vlgmr.msra.gmra.mxu0 %vm271_vm1, %v523_v4  ;;  %v267_v4 = vadd.f32 %v1333_v3, %v259_v2 }
  0x8a   : > { %1403 = vmatprep.mubr.msk.f32.mxu0 %vm1482_vm0, %v1481_v0  ;;  %1402 = vmatpush3.msra.mxu0 %v253_v48 }
  0x8b   : > { %1411 = vmatprep.subr.mxu0 %v1481_v0 }
 0x145   : > { %v342_v12 = vpop.f32.mrf.mxu0 }
 0x146   : > { %v346_v13 = vmul.f32 0.35355338, %v342_v12 }
 0x147   : > { %v1380_v15 = vpop.f32.mrf.mxu0 }
 0x148   : > { %v353_v16 = vmul.f32 %v1563_v11, %v346_v13 }
 0x149   : > { %v596_v17 = vpop.f32.mrf.mxu0 }
 0x14a   : > { %v600_v18 = vmul.f32 0.35355338, %v596_v17  ;;  %v360_v19 = vadd.f32 %v1565_v14, %v353_v16  ;;  %v254_v17 = vld [vmem:[%s1655_s2 + $0x10] sm:$0xff] }
 0x14b   : > { %v1395_v20 = vpop.f32.mrf.mxu0 }
 0x14c   : > { %v601_v21 = vmul.f32 %v600_v18, %v1563_v11  ;;  %v361_v22 = vsel %vm271_vm1, %v360_v19, -inf }
 0x14d   : > { %362 = vmax.xlane.f32.xlu1 %v361_v22 }
 0x14e   : > { %v602_v23 = vadd.f32 %v601_v21, %v1565_v14 }
 0x150   : > { %v603_v24 = vsel %vm271_vm1, %v602_v23, -inf }
 0x151   : > { %604 = vmax.xlane.f32.xlu1 %v603_v24 }
 0x1d6   : > { %v363_v25 = vpop.xlane.xlu1 %362 }
 0x1d7   : > { %v364_v26 = vsub.f32 %v360_v19, %v363_v25 }
 0x1d9   : > { %v365_v27 = vmul.f32 1.442695, %v364_v26 }
 0x1da   : > { %v605_v28 = vpop.xlane.xlu1 %604 }
 0x1db   : > { %1457 = vpow2.f32 %v365_v27  ;;  %v606_v29 = vsub.f32 %v602_v23, %v605_v28 }
 0x1dd   : > { %v607_v30 = vmul.f32 1.442695, %v606_v29 }
 0x1df   : > { %1459 = vpow2.f32 %v607_v30 }
 0x1e8   : > { %v1458_v31 = vpop.eup %1457 }
 0x1e9   : > { %v367_v32 = vsel %vm271_vm1, %v1458_v31, 0.0 }
 0x1ea   : > { %368 = vadd.xlane.f32.xlu0 %v367_v32  ;;  %v255_v32 = vld [vmem:[%s1655_s2 + $0x18] sm:$0xff] }
 0x1ec   : > { %v1460_v33 = vpop.eup %1459 }
 0x1ed   : > { %v609_v34 = vsel %vm271_vm1, %v1460_v33, 0.0 }
 0x1ee   : > { %610 = vadd.xlane.f32.xlu1 %v609_v34 }
 0x1ff   : > { %614 = vrot.lane.b32.xlu1 %v1544_v1, %s1487_s6 }
 0x200   : > { %372 = vrot.lane.b32.xlu0 %v1544_v1, %s1486_s30  ;;  %s250_s30 = scalar_lea.vmem %s1658_s5, %s1538_s20 }
 0x204   : > { %766 = vrot.lane.b32.xlu0 %v1544_v1, %s1488_s7 }
 0x208   : > { %764 = vrot.lane.b32.xlu0 %v1544_v1, %s1489_s8 }
 0x273   : > { %v369_v35 = vpop.xlane.xlu0 %368 }
 0x274   : > { %1461 = vrcp.f32 %v369_v35 }
 0x277   : > { %v373_v36 = vpop.permute.xlu0 %372  ;;  %v611_v40 = vpop.xlane.xlu1 %610 }
 0x278   : > { %1382 = vmatpush3.msra.mxu1 %v373_v36  ;;  %1463 = vrcp.f32 %v611_v40 }
 0x279   : > { %1386 = vmatprep.subr.mxu1 %v1481_v0 }
 0x27b   : > { %v615_v41 = vpop.permute.xlu1 %614  ;;  %v767_v44 = vpop.permute.xlu0 %766 }
 0x27f   : > { %v765_v47 = vpop.permute.xlu0 %764 }
 0x281   : > { %v1462_v37 = vpop.eup %1461 }
 0x282   : > { %v371_v38 = vmul.f32 %v1462_v37, %v1458_v31 }
 0x284   : > { %1384 = vmatmul.mubr.msk.f32.vlgmr.msra.gmra.mxu1 %vm271_vm1, %v371_v38 }
 0x285   : > { %1387 = vmatpush3.msra.mxu1 %v252_v39  ;;  %1388 = vmatprep.mubr.msk.f32.mxu1 %vm1482_vm0, %v1481_v0  ;;  %v1464_v42 = vpop.eup %1463 }
 0x286   : > { %1396 = vmatprep.subr.mxu1 %v1481_v0  ;;  %v613_v46 = vmul.f32 %v1464_v42, %v1460_v33 }
 0x344   : > { %v444_v43 = vpop.f32.mrf.mxu1 }
 0x345   : > { %1389 = vmatmul.mubr.msk.f32.vlgmr.msra.gmra.mxu1 %vm271_vm1, %v444_v43 }
 0x346   : > { %1397 = vmatpush3.msra.mxu1 %v615_v41  ;;  %v1385_v45 = vpop.f32.mrf.mxu1  ;;  %1398 = vmatprep.mubr.msk.f32.mxu1 %vm1482_vm0, %v1481_v0 }
 0x347   : > { %1406 = vmatprep.subr.mxu1 %v1481_v0 }
 0x349   : > { %1399 = vmatmul.mubr.msk.f32.vlgmr.msra.gmra.mxu1 %vm271_vm1, %v613_v46 }
 0x34a   : > { %1407 = vmatpush3.xpose.msk.msra.mxu1 %vm271_vm1, %v767_v44  ;;  %1408 = vmatprep.mubr.msk.f32.mxu1 %vm1482_vm0, %v1481_v0 }
 0x34b   : > { %1416 = vmatprep.subr.mxu1 %v1481_v0 }
 0x34d   : > { %1409 = vmatmul.mubr.msk.f32.vlgmr.msra.gmra.mxu1 %vm271_vm1, %v765_v47 }
 0x34e   : > { %1418 = vmatprep.mubr.msk.f32.mxu1 %vm1482_vm0, %v1481_v0  ;;  %1417 = vmatpush3.msra.mxu1 %v254_v17 }
 0x34f   : > { %1426 = vmatprep.subr.mxu1 %v1481_v0 }
 0x405   : > { %v517_v49 = vpop.f32.mrf.mxu1 }
 0x406   : > { %v521_v5 = vadd.f32 %v517_v49, %v267_v4 }
 0x407   : > { %v1390_v50 = vpop.f32.mrf.mxu1 }
 0x409   : > { %v686_v51 = vpop.f32.mrf.mxu1 }
 0x40a   : > { %1404 = vmatmul.mubr.msk.f32.vlgmr.msra.gmra.mxu0 %vm271_vm1, %v686_v51 }
 0x40b   : > { %v1400_v52 = vpop.f32.mrf.mxu1  ;;  %1413 = vmatprep.mubr.msk.f32.mxu0 %vm1482_vm0, %v1481_v0 }
 0x40d   : > { %v838_v53 = vpop.f32.mrf.mxu1 }
 0x40e   : > { %v842_v54 = vmul.f32 0.35355338, %v838_v53 }
 0x40f   : > { %v1410_v55 = vpop.f32.mrf.mxu1 }
 0x410   : > { %v843_v56 = vmul.f32 %v842_v54, %v1563_v11 }
 0x412   : > { %v844_v57 = vadd.f32 %v843_v56, %v1565_v14 }
 0x414   : > { %v845_v58 = vsel %vm271_vm1, %v844_v57, -inf }
 0x415   : > { %846 = vmax.xlane.f32.xlu1 %v845_v58 }
 0x426   : > { %1008 = vrot.lane.b32.xlu1 %v1544_v1, %s1490_s13 }
 0x42a   : > { %1006 = vrot.lane.b32.xlu1 %v1544_v1, %s1491_s14 }
 0x49e   : > { %v847_v59 = vpop.xlane.xlu1 %846 }
 0x49f   : > { %v848_v60 = vsub.f32 %v844_v57, %v847_v59 }
 0x4a1   : > { %v849_v61 = vmul.f32 1.442695, %v848_v60 }
 0x4a2   : > { %v1009_v12 = vpop.permute.xlu1 %1008 }
 0x4a3   : > { %1465 = vpow2.f32 %v849_v61 }
 0x4a6   : > { %v1007_v16 = vpop.permute.xlu1 %1006 }
 0x4b0   : > { %v1466_v62 = vpop.eup %1465 }
 0x4b1   : > { %v851_v63 = vsel %vm271_vm1, %v1466_v62, 0.0 }
 0x4b2   : > { %852 = vadd.xlane.f32.xlu0 %v851_v63 }
 0x4c8   : > { %856 = vrot.lane.b32.xlu0 %v1544_v1, %s1492_s22 }
 0x4ca   : > { %v759_v6 = vpop.f32.mrf.mxu0 }
 0x4cb   : > { %v763_v7 = vadd.f32 %v759_v6, %v521_v5 }
 0x4cc   : > { %v1405_v8 = vpop.f32.mrf.mxu0 }
 0x53b   : > { %v853_v9 = vpop.xlane.xlu0 %852 }
 0x53c   : > { %1467 = vrcp.f32 %v853_v9 }
 0x53f   : > { %v857_v10 = vpop.permute.xlu0 %856 }
 0x540   : > { %1412 = vmatpush3.msra.mxu0 %v857_v10 }
 0x541   : > { %1421 = vmatprep.subr.mxu0 %v1481_v0 }
 0x549   : > { %v1468_v13 = vpop.eup %1467 }
 0x54a   : > { %v855_v15 = vmul.f32 %v1468_v13, %v1466_v62 }
 0x54c   : > { %1414 = vmatmul.mubr.msk.f32.vlgmr.msra.gmra.mxu0 %vm271_vm1, %v855_v15 }
 0x54d   : > { %1422 = vmatpush3.xpose.msk.msra.mxu0 %vm271_vm1, %v1009_v12  ;;  %1423 = vmatprep.mubr.msk.f32.mxu0 %vm1482_vm0, %v1481_v0 }
 0x54e   : > { %1431 = vmatprep.subr.mxu0 %v1481_v0 }
 0x550   : > { %1424 = vmatmul.mubr.msk.f32.vlgmr.msra.gmra.mxu0 %vm271_vm1, %v1007_v16 }
 0x551   : > { %1433 = vmatprep.mubr.msk.f32.mxu0 %vm1482_vm0, %v1481_v0  ;;  %1432 = vmatpush3.msra.mxu0 %v255_v32 }
 0x60c   : > { %v928_v18 = vpop.f32.mrf.mxu0 }
 0x60d   : > { %1419 = vmatmul.mubr.msk.f32.vlgmr.msra.gmra.mxu1 %vm271_vm1, %v928_v18 }
 0x60e   : > { %v1415_v19 = vpop.f32.mrf.mxu0  ;;  %1428 = vmatprep.mubr.msk.f32.mxu1 %vm1482_vm0, %v1481_v0 }
 0x610   : > { %v1080_v20 = vpop.f32.mrf.mxu0 }
 0x611   : > { %v1084_v21 = vmul.f32 0.35355338, %v1080_v20 }
 0x612   : > { %v1425_v22 = vpop.f32.mrf.mxu0 }
 0x613   : > { %v1085_v23 = vmul.f32 %v1084_v21, %v1563_v11 }
 0x615   : > { %v1086_v24 = vadd.f32 %v1085_v23, %v1565_v14 }
 0x617   : > { %v1087_v25 = vsel %vm271_vm1, %v1086_v24, -inf }
 0x618   : > { %1088 = vmax.xlane.f32.xlu0 %v1087_v25 }
 0x62e   : > { %1098 = vrot.lane.b32.xlu0 %v1544_v1, %s1493_s25 }
 0x6a1   : > { %v1089_v26 = vpop.xlane.xlu0 %1088 }
 0x6a2   : > { %v1090_v27 = vsub.f32 %v1086_v24, %v1089_v26 }
 0x6a4   : > { %v1091_v28 = vmul.f32 1.442695, %v1090_v27 }
 0x6a5   : > { %v1099_v30 = vpop.permute.xlu0 %1098 }
 0x6a6   : > { %1469 = vpow2.f32 %v1091_v28  ;;  %1427 = vmatpush3.msra.mxu1 %v1099_v30 }
 0x6b3   : > { %v1470_v29 = vpop.eup %1469 }
 0x6b4   : > { %v1093_v0 = vsel %vm271_vm1, %v1470_v29, 0.0 }
 0x6b5   : > { %1094 = vadd.xlane.f32.xlu1 %v1093_v0 }
 0x6cd   : > { %v1001_v11 = vpop.f32.mrf.mxu1 }
 0x6ce   : > { %v1005_v31 = vadd.f32 %v1001_v11, %v763_v7 }
 0x6cf   : > { %v1420_v14 = vpop.f32.mrf.mxu1 }
 0x73e   : > { %v1095_v1 = vpop.xlane.xlu1 %1094 }
 0x73f   : > { %1471 = vrcp.f32 %v1095_v1 }
 0x74c   : > { %v1472_v33 = vpop.eup %1471 }
 0x74d   : > { %v1097_v34 = vmul.f32 %v1472_v33, %v1470_v29 }
 0x74f   : > { %1429 = vmatmul.mubr.msk.f32.vlgmr.msra.gmra.mxu1 %vm271_vm1, %v1097_v34 }
 0x80f   : > { %v1170_v35 = vpop.f32.mrf.mxu1 }
 0x810   : > { %1434 = vmatmul.mubr.msk.f32.vlgmr.msra.gmra.mxu0 %vm271_vm1, %v1170_v35 }
 0x811   : > { %v1430_v36 = vpop.f32.mrf.mxu1 }
 0x8d0   : > { %v1243_v37 = vpop.f32.mrf.mxu0 }
 0x8d1   : > { %v1247_v38 = vadd.f32 %v1243_v37, %v1005_v31 }
 0x8d2   : > { %v1435_v39 = vpop.f32.mrf.mxu0 }
 0x8d3   : > { %1249 = vst.msk [vmem:[%s250_s30] sm:$0xff] %vm1248_vm2, %v1247_v38 }
 0x8d4 PF: > { %s15_s18 = sadd.s32 1, %s1479_s18  }
 0x8d5   : > { %p12_p4 = scmp.ge.s32.totalorder %s15_s18, 4  }
 0x8d7   :  { %14 = sbr.rel (!%p12_p4) target bundleno = 1 (0x1), region = 76 }

</bundles_post_ra>
